<compile_context>
chip_gen: v7x
topology: tpu7x:2x2x1
jax: 0.10.0
libtpu: 0.0.40
codegen_flags: <defaults>
</compile_context>

<pallas_src>
import functools

import numpy as np
import jax
import jax.numpy as jnp
from jax.experimental import pallas as pl
from jax.experimental.pallas import tpu as pltpu


def _attention_head_kernel(x_ref, wqkv_ref, bqkv_ref, o_ref, *,
                           head_size, scale, mxu_dtype):
    Bt, N, D = x_ref.shape
    H = head_size

    # ---- fused QKV projection: one MXU pass over x ---------------------------
    # (Bt, N, D) -> (Bt*N, D) is a leading-dim merge only (minor dims untouched).
    x2 = x_ref[...].reshape(Bt * N, D).astype(mxu_dtype)
    wqkv = wqkv_ref[...].astype(mxu_dtype)                        # (D, 3H)
    qkv = jnp.dot(x2, wqkv, preferred_element_type=jnp.float32)   # (Bt*N, 3H) f32
    qkv = qkv + bqkv_ref[...]                                     # (1, 3H) broadcast
    qkv = qkv.reshape(Bt, N, 3 * H)

    # Fold 1/sqrt(H) into q (N*H elements) instead of the (N*N) logits.
    q = (qkv[..., :H] * scale).astype(mxu_dtype)
    k = qkv[..., H:2 * H].astype(mxu_dtype)
    v = qkv[..., 2 * H:].astype(mxu_dtype)

    # ---- QK^T as a batched contraction (no materialized transpose) -----------
    logits = jnp.einsum("bnh,bmh->bnm", q, k,
                        preferred_element_type=jnp.float32)       # (Bt, N, N) f32

    # ---- numerically stable softmax; stats stay in f32 -----------------------
    m = jnp.max(logits, axis=-1, keepdims=True)
    p = jnp.exp(logits - m)
    l = jnp.sum(p, axis=-1, keepdims=True)
    attn = (p * pl.reciprocal(l, approx=True)).astype(mxu_dtype)  # EUP, not VALU div

    # ---- PV matmul ------------------------------------------------------------
    out = jnp.einsum("bnm,bmh->bnh", attn, v,
                     preferred_element_type=jnp.float32)          # (Bt, N, H) f32
    o_ref[...] = out.astype(o_ref.dtype)


def _per_step_vmem_bytes(Bt, N, D, H):
    """Rough per-grid-step VMEM working-set estimate (f32-equivalent)."""
    f32 = 4
    x_io = 2 * Bt * N * D * f32            # double-buffered input block
    o_io = 2 * Bt * N * H * f32            # double-buffered output block
    w = (D * 3 * H + 3 * H) * f32          # resident fused weight + bias
    inter = Bt * N * (2 * 3 * H + 3 * N + 2 * H) * f32   # qkv/q/k/v/logits/p/attn/out
    return x_io + o_io + w + inter


def attention_head_forward(x, wq, bq, wk, bk, wv, bv, *,
                           batch_block=None, mxu_dtype=jnp.bfloat16):
    """x: (B, N, D); w*: (D, H) (pre-transposed nn.Linear weight); b*: (1, H)."""
    B, N, D = x.shape
    H = wq.shape[1]
    scale = 1.0 / float(H) ** 0.5

    # Fuse the three projections once (in a real model: do this at init).
    wqkv = jnp.concatenate([wq, wk, wv], axis=1)     # (D, 3H)
    bqkv = jnp.concatenate([bq, bk, bv], axis=1)     # (1, 3H)

    if batch_block is None:
        # Largest block that still leaves >= 2 grid steps (keeps both v7x TCs busy),
        # falling back to 1 if the per-step working set would be too large.
        batch_block = B // 2 if (B >= 2 and B % 2 == 0) else 1
        if _per_step_vmem_bytes(batch_block, N, D, H) > 24 * 2**20:
            batch_block = 1
    assert B % batch_block == 0, "batch_block must divide the batch size"
    grid = (B // batch_block,)

    vmem_limit = int(min(64 * 2**20,
                         max(16 * 2**20,
                             4 * _per_step_vmem_bytes(batch_block, N, D, H))))

    kernel = functools.partial(_attention_head_kernel,
                               head_size=H, scale=scale, mxu_dtype=mxu_dtype)

    return pl.pallas_call(
        kernel,
        out_shape=jax.ShapeDtypeStruct((B, N, H), x.dtype),
        grid_spec=pltpu.PrefetchScalarGridSpec(
            num_scalar_prefetch=0,
            grid=grid,
            in_specs=[
                pl.BlockSpec((batch_block, N, D), lambda b: (b, 0, 0)),  # x block
                pl.BlockSpec((D, 3 * H), lambda b: (0, 0)),   # fused W, VMEM-resident
                pl.BlockSpec((1, 3 * H), lambda b: (0, 0)),   # fused b, VMEM-resident
            ],
            out_specs=pl.BlockSpec((batch_block, N, H), lambda b: (b, 0, 0)),
        ),
        compiler_params=pltpu.CompilerParams(
            dimension_semantics=("parallel",),
            vmem_limit_bytes=vmem_limit,
        ),
    )(x, wqkv, bqkv)


def _reference(x, wq, bq, wk, bk, wv, bv):
    H = wq.shape[1]
    q = x @ wq + bq
    k = x @ wk + bk
    v = x @ wv + bv
    logits = jnp.einsum("bnh,bmh->bnm", q, k) / jnp.float32(H) ** 0.5
    attn = jax.nn.softmax(logits, axis=-1)
    return jnp.einsum("bnm,bmh->bnh", attn, v)


if __name__ == "__main__":
    # Small shapes consistent with the module: batch=4, seq=16, d_model=32, head_size=16.
    B, N, D, H = 4, 16, 32, 16

    key = jax.random.PRNGKey(0)
    kx, kq, kk, kv, kbq, kbk, kbv = jax.random.split(key, 7)

    x = jax.random.normal(kx, (B, N, D), dtype=jnp.float32)
    # Weights stored pre-transposed as (D, H) so the kernel computes x @ W + b,
    # matching PyTorch nn.Linear's y = x @ W^T + b.
    s = 1.0 / np.sqrt(D)
    wq = jax.random.normal(kq, (D, H), dtype=jnp.float32) * s
    wk = jax.random.normal(kk, (D, H), dtype=jnp.float32) * s
    wv = jax.random.normal(kv, (D, H), dtype=jnp.float32) * s
    bq = jax.random.normal(kbq, (1, H), dtype=jnp.float32) * 0.1
    bk = jax.random.normal(kbk, (1, H), dtype=jnp.float32) * 0.1
    bv = jax.random.normal(kbv, (1, H), dtype=jnp.float32) * 0.1

    out = jax.block_until_ready(attention_head_forward(x, wq, bq, wk, bk, wv, bv))

    ref = jax.block_until_ready(_reference(x, wq, bq, wk, bk, wv, bv))
    # Tolerances relaxed for bf16 MXU operands + approx reciprocal (f32 accumulation
    # and f32 softmax stats keep the error at the few-percent level).
    np.testing.assert_allclose(np.asarray(out), np.asarray(ref), rtol=5e-2, atol=5e-2)

    print("KERNEL_OK")
</pallas_src>

<mosaic_0001>
module attributes {stable_mosaic.version = 11 : i64} {
  func.func @_attention_head_kernel(%arg0: i32, %arg1: memref<2x16x32xf32, #tpu.memory_space<vmem>>, %arg2: memref<32x48xf32, #tpu.memory_space<vmem>>, %arg3: memref<1x48xf32, #tpu.memory_space<vmem>>, %arg4: memref<2x16x16xf32, #tpu.memory_space<vmem>>) attributes {dimension_semantics = [#tpu.dimension_semantics<parallel>], iteration_bounds = array<i64: 2>, scalar_prefetch = 0 : i64, scratch_operands = 0 : i64, tpu.core_type = #tpu.core_type<tc>, window_params = [{transform_indices = @transform_0, window_bounds = array<i64: 2, 16, 32>}, {pipeline_mode = #tpu.pipeline_mode<synchronous>, transform_indices = @transform_1, window_bounds = array<i64: 32, 48>}, {pipeline_mode = #tpu.pipeline_mode<synchronous>, transform_indices = @transform_2, window_bounds = array<i64: 1, 48>}, {transform_indices = @transform_3, window_bounds = array<i64: 2, 16, 16>}]} {
    %c0 = arith.constant 0 : index
    %c0_0 = arith.constant 0 : index
    %c0_1 = arith.constant 0 : index
    %0 = vector.load %arg1[%c0, %c0_0, %c0_1] : memref<2x16x32xf32, #tpu.memory_space<vmem>>, vector<2x16x32xf32>
    %1 = vector.shape_cast %0 : vector<2x16x32xf32> to vector<32x32xf32>
    %2 = arith.truncf %1 : vector<32x32xf32> to vector<32x32xbf16>
    %c0_2 = arith.constant 0 : index
    %c0_3 = arith.constant 0 : index
    %3 = vector.load %arg2[%c0_2, %c0_3] : memref<32x48xf32, #tpu.memory_space<vmem>>, vector<32x48xf32>
    %4 = arith.truncf %3 : vector<32x48xf32> to vector<32x48xbf16>
    %cst = arith.constant dense<0.000000e+00> : vector<32x48xf32>
    %5 = tpu.matmul %2, %4, %cst {dimension_numbers = #tpu.dot_dimension_numbers<[1], [0], [0], [1], [0, 0, 1, 1], [], []>} : vector<32x32xbf16>, vector<32x48xbf16>, vector<32x48xf32> -> vector<32x48xf32>
    %c0_4 = arith.constant 0 : index
    %c0_5 = arith.constant 0 : index
    %6 = vector.load %arg3[%c0_4, %c0_5] : memref<1x48xf32, #tpu.memory_space<vmem>>, vector<1x48xf32>
    %7 = vector.broadcast %6 : vector<1x48xf32> to vector<32x48xf32>
    %8 = arith.addf %5, %7 : vector<32x48xf32>
    %9 = vector.shape_cast %8 : vector<32x48xf32> to vector<2x16x48xf32>
    %10 = vector.extract_strided_slice %9 {offsets = [0, 0, 0], sizes = [2, 16, 16], strides = [1, 1, 1]} : vector<2x16x48xf32> to vector<2x16x16xf32>
    %cst_6 = arith.constant 2.500000e-01 : f32
    %11 = vector.broadcast %cst_6 : f32 to vector<2x16x16xf32>
    %12 = arith.mulf %10, %11 : vector<2x16x16xf32>
    %13 = arith.truncf %12 : vector<2x16x16xf32> to vector<2x16x16xbf16>
    %14 = vector.extract_strided_slice %9 {offsets = [0, 0, 16], sizes = [2, 16, 16], strides = [1, 1, 1]} : vector<2x16x48xf32> to vector<2x16x16xf32>
    %15 = arith.truncf %14 : vector<2x16x16xf32> to vector<2x16x16xbf16>
    %16 = vector.extract_strided_slice %9 {offsets = [0, 0, 32], sizes = [2, 16, 16], strides = [1, 1, 1]} : vector<2x16x48xf32> to vector<2x16x16xf32>
    %17 = arith.truncf %16 : vector<2x16x16xf32> to vector<2x16x16xbf16>
    "tpu.trace_start"() <{level = 10 : i32, message = "bnh,bmh->bnm"}> : () -> ()
    %cst_7 = arith.constant dense<0.000000e+00> : vector<2x16x16xf32>
    %18 = tpu.matmul %13, %15, %cst_7 {dimension_numbers = #tpu.dot_dimension_numbers<[2], [2], [1], [1], [0, 0, 0, 1, 1, 1], [0], [0]>} : vector<2x16x16xbf16>, vector<2x16x16xbf16>, vector<2x16x16xf32> -> vector<2x16x16xf32>
    "tpu.trace_stop"() : () -> ()
    %cst_8 = arith.constant dense<0xFF800000> : vector<2x16xf32>
    %19 = vector.multi_reduction <maximumf>, %18, %cst_8 [2] : vector<2x16x16xf32> to vector<2x16xf32>
    %20 = vector.shape_cast %19 : vector<2x16xf32> to vector<2x16x1xf32>
    %21 = vector.broadcast %20 : vector<2x16x1xf32> to vector<2x16x16xf32>
    %22 = arith.subf %18, %21 : vector<2x16x16xf32>
    %23 = math.exp %22 : vector<2x16x16xf32>
    %cst_9 = arith.constant dense<0.000000e+00> : vector<2x16xf32>
    %24 = vector.multi_reduction <add>, %23, %cst_9 [2] : vector<2x16x16xf32> to vector<2x16xf32>
    %25 = vector.shape_cast %24 : vector<2x16xf32> to vector<2x16x1xf32>
    %26 = tpu.reciprocal %25 {approx = true} : vector<2x16x1xf32> -> vector<2x16x1xf32>
    %27 = vector.broadcast %26 : vector<2x16x1xf32> to vector<2x16x16xf32>
    %28 = arith.mulf %23, %27 : vector<2x16x16xf32>
    %29 = arith.truncf %28 : vector<2x16x16xf32> to vector<2x16x16xbf16>
    "tpu.trace_start"() <{level = 10 : i32, message = "bnm,bmh->bnh"}> : () -> ()
    %cst_10 = arith.constant dense<0.000000e+00> : vector<2x16x16xf32>
    %30 = tpu.matmul %29, %17, %cst_10 {dimension_numbers = #tpu.dot_dimension_numbers<[2], [1], [1], [2], [0, 0, 0, 1, 1, 2], [0], [0]>} : vector<2x16x16xbf16>, vector<2x16x16xbf16>, vector<2x16x16xf32> -> vector<2x16x16xf32>
    "tpu.trace_stop"() : () -> ()
    %c0_11 = arith.constant 0 : index
    %c0_12 = arith.constant 0 : index
    %c0_13 = arith.constant 0 : index
    %31 = vector.load %arg4[%c0_11, %c0_12, %c0_13] : memref<2x16x16xf32, #tpu.memory_space<vmem>>, vector<2x16x16xf32>
    tpu.vector_store %arg4[%c0_11, %c0_12, %c0_13], %30 {strides = array<i32>} : memref<2x16x16xf32, #tpu.memory_space<vmem>>, vector<2x16x16xf32>,
    return
  }
  func.func @transform_0(%arg0: i32) -> (i32, i32, i32) {
    %c0_i32 = arith.constant 0 : i32
    %c0_i32_0 = arith.constant 0 : i32
    %c0_i32_1 = arith.constant 0 : i32
    return %arg0, %c0_i32, %c0_i32_0 : i32, i32, i32
  }
  func.func @transform_1(%arg0: i32) -> (i32, i32) {
    %c0_i32 = arith.constant 0 : i32
    %c0_i32_0 = arith.constant 0 : i32
    %c0_i32_1 = arith.constant 0 : i32
    return %c0_i32, %c0_i32_0 : i32, i32
  }
  func.func @transform_2(%arg0: i32) -> (i32, i32) {
    %c0_i32 = arith.constant 0 : i32
    %c0_i32_0 = arith.constant 0 : i32
    %c0_i32_1 = arith.constant 0 : i32
    return %c0_i32, %c0_i32_0 : i32, i32
  }
  func.func @transform_3(%arg0: i32) -> (i32, i32, i32) {
    %c0_i32 = arith.constant 0 : i32
    %c0_i32_0 = arith.constant 0 : i32
    %c0_i32_1 = arith.constant 0 : i32
    return %arg0, %c0_i32, %c0_i32_0 : i32, i32, i32
  }
}

</mosaic_0001>

<bundles_post_ra>
// kernel: tpu_custom_call.1
= control target key start
LH: loop header
LB: loop body
LE: loop exit
PB: predicated region body
PF: predicated region fallthrough
CT: control target
= control target key end

     0   :  { %8 = vsyncpa [#allocation3], 0  ;;  %s1191_s0 = inlined_call_operand.hbm [shape: f32[4,16,32], index: 0, kind: input, shape index: {}]   ;;  %s1192_s1 = inlined_call_operand.hbm [shape: f32[32,48], index: 1, kind: input, shape index: {}]   ;;  %s1193_s2 = inlined_call_operand.vmem [shape: f32[1,48], index: 2, kind: input, shape index: {}]   ;;  %s1194_s3 = inlined_call_operand.hbm [shape: f32[4,16,16], index: 3, kind: output, shape index: {}]  }
   0x1   :  { %10 = vsyncpa [#allocation3 + $0x1], 0 }
   0x2   :  { %11 = vsyncpa [#allocation6], 0 }
   0x3   :  { %12 = vsyncpa [#allocation4], 0 }
   0x4   :  { %14 = vsyncpa [#allocation4 + $0x1], 0  ;;  %s949_s12 = smov 0   ;;  %s951_s13 = smov 0  }
   0x5   :  { %s953_s14 = smov 0   ;;  %s955_s15 = smov 0  }
   0x6 LB: > { %s970_s16 = sadd.s32 4294967295, %s916_s15   ;;  %s634_s17 = sadd.s32 4294967294, %s916_s15   ;;  %s916_s15 = sphi %s955_s15, %s1214_s15   ;;  %s912_s14 = sphi %s953_s14, %s1213_s14   ;;  %s908_s13 = sphi %s951_s13, %s1212_s13   ;;  %s904_s12 = sphi %s949_s12, %s1211_s12  }
   0x7   : > { %p40_p0 = scmp.ne.s32.totalorder %s908_s13, %s904_s12  ;;  %p1195_p1 = scmp.eq.s32.totalorder %s970_s16, 0 }
   0x8   : > { %p112_p3 = scmp.eq.s32.totalorder %s634_s17, 1  ;;  %p635_p5 = scmp.ge.s32.totalorder %s916_s15, 1 }
   0x9   : > { %p979_p4 = por %p1195_p1, %p40_p0  ;;  %p119_p7 = scmp.lt.s32.totalorder %s916_s15, 3 }
   0xa   : > { %p984_p6 = por %p112_p3, %p40_p0  ;;  %s918_s21 = smov [#allocation5]  }
   0xb   : > { %s1198_s18 = scalar_select %p979_p4, 1, 0 }
   0xc   : > { %s1199_s19 = scalar_select %p984_p6, 1, 0 }
   0xd   : > { %p989_p8 = pnand %p635_p5, %p119_p7  ;;  %s131_s22 = sshll.u32 %s918_s21, 4  ;;  %s993_s22 = int_to_ptr.vmem [resolvable:$true] %s131_s22 }
   0xe   : > { %s1005_s24 = sadd.s32 1, %s916_s15   ;;  %s27_s25 = sadd.s32 1, %s912_s14 }
   0xf   : > { %s1200_s20 = scalar_select %p989_p8, 1, 0 }
  0x10   : > { %p715_p9 = pneg %p989_p8  ;;  %s24_s26 = ssub.s32 %s916_s15, %s1005_s24 }
  0x11   : > { %s788_s29 = scalar_lea.hbm %s1192_s1, 512 }
  0x12   : > { %p1000_p11 = pnand %p715_p9, %p1195_p1  ;;  %p789_p12 = scmp.ne.s32.totalorder %s1192_s1, %s788_s29 }
  0x13   : > { %p795_p5 = scmp.lt.u32.totalorder %s788_s29, %s1192_s1 }
  0x14   : > { %p790_p13 = pneg %p1000_p11 }
  0x16   : > { %p791_p0 = pnand %p790_p13, %p789_p12 }
  0x18   : > { %p792_p3 = pneg %p791_p0 }
  0x1a   : > { %p797_p7 = pnand %p795_p5, %p792_p3 }
  0x1c   : > { %800 = shalt.err (!%p797_p7)
}
  0x1d   : > { %s801_s7 = scalar_lea.vmem %s993_s22, 512  ;;  %p809_p2 = scmp.lt.s32.totalorder %s993_s22, %s993_s22 }
  0x1e   : > { %p802_p9 = scmp.ne.s32.totalorder %s993_s22, %s801_s7  ;;  %p810_p6 = scmp.lt.s32.totalorder %s801_s7, %s801_s7 }
  0x20   : > { %p804_p10 = pnand %p802_p9, %p790_p13  ;;  %p811_p4 = por %p810_p6, %p809_p2 }
  0x22   : > { %p805_p1 = pneg %p804_p10 }
  0x24   : > { %p812_p8 = pnand %p811_p4, %p805_p1 }
  0x26   : > { %815 = shalt.err (!%p812_p8)
}
  0x27   : > { %s919_s8 = smov 128   ;;  %s920_s9 = smov 8  }
  0x28   : > { %718 = dma.hbm_to_vmem [thread:$0]  (!%p1000_p11), %s1192_s1, 512, %s993_s22, [#allocation6], %s919_s8, %s919_s8, %s920_s9  }
  0x29   : > { %p25_p1 = scmp.eq.s32.totalorder %s24_s26, 0  ;;  %p34_p2 = scmp.ne.s32.totalorder %s912_s14, %s908_s13 }
  0x2a   : > { %p35_p4 = scmp.eq.s32.totalorder %s916_s15, 0  ;;  %p728_p6 = scmp.lt.s32.totalorder %s916_s15, 2 }
  0x2b   : > { %s1039_s17 = scalar_select %p25_p1, %s912_s14, %s27_s25  }
  0x2c   : > { %p36_p8 = por %p35_p4, %p34_p2  ;;  %p1202_p10 = scmp.eq.s32.totalorder %s970_s16, 1 }
  0x2d   : > { %s148_s23 = sand.u32 1, %s912_s14   ;;  %s660_s27 = sshll.u32 %s916_s15, 9 }
  0x2e   : > { %p1043_p12 = por %p1202_p10, %p34_p2  ;;  %s638_s28 = sshll.u32 %s148_s23, 5 }
  0x2f   : > { %s1052_s4 = scalar_lea.hbm %s1191_s0, %s660_s27  ;;  %s152_s22 = scalar_lea.vmem [#allocation2], %s638_s28 }
  0x30   : > { %s160_s25 = sshll.u32 %s152_s22, 4  ;;  %p1054_p11 = pnand %p728_p6, %p36_p8  ;;  %s1058_s25 = int_to_ptr.vmem [resolvable:$true] %s160_s25 }
  0x31   : > { %s1060_s5 = scalar_lea.sflag [#allocation3], %s148_s23  ;;  %s816_s6 = scalar_lea.hbm %s1052_s4, 512 }
  0x32   : > { %p817_p13 = scmp.ne.s32.totalorder %s1052_s4, %s816_s6  ;;  %p818_p0 = pneg %p1054_p11 }
  0x33   : > { %s821_s11 = scalar_lea.hbm %s1191_s0, 1024  ;;  %p822_p7 = scmp.lt.u32.totalorder %s1052_s4, %s1191_s0 }
  0x34   : > { %p819_p3 = pnand %p818_p0, %p817_p13  ;;  %p823_p9 = scmp.lt.u32.totalorder %s821_s11, %s816_s6 }
  0x35   : > { %p825_p2 = scmp.lt.u32.totalorder %s816_s6, %s1052_s4 }
  0x36   : > { %p820_p5 = pneg %p819_p3  ;;  %p824_p1 = por %p823_p9, %p822_p7 }
  0x38   : > { %p826_p4 = por %p825_p2, %p824_p1 }
  0x3a   : > { %p827_p6 = pnand %p826_p4, %p820_p5 }
  0x3c   : > { %830 = shalt.err (!%p827_p6)
}
  0x3d   : > { %s831_s23 = scalar_lea.vmem %s1058_s25, 512  ;;  %s921_s29 = smov [#allocation2]  }
  0x3e   : > { %p832_p8 = scmp.ne.s32.totalorder %s1058_s25, %s831_s23  ;;  %s836_s30 = sshll.u32 %s921_s29, 4  ;;  %s837_s30 = int_to_ptr.vmem [resolvable:$false] %s836_s30 }
  0x3f   : > { %s838_s22 = scalar_lea.vmem %s837_s30, 1024  ;;  %p839_p3 = scmp.lt.s32.totalorder %s1058_s25, %s837_s30 }
  0x40   : > { %p834_p10 = pnand %p832_p8, %p818_p0  ;;  %p840_p7 = scmp.lt.s32.totalorder %s838_s22, %s831_s23 }
  0x42   : > { %p835_p13 = pneg %p834_p10  ;;  %p841_p9 = por %p840_p7, %p839_p3 }
  0x44   : > { %p842_p1 = pnand %p841_p9, %p835_p13 }
  0x46   : > { %845 = shalt.err (!%p842_p1)
}
  0x47   : > { %722 = dma.hbm_to_vmem [thread:$0]  (!%p1054_p11), %s1052_s4, 512, %s1058_s25, %s1060_s5, %s919_s8, %s919_s8, %s920_s9  }
  0x48   : > { %p1205_p0 = scmp.ne.s32.totalorder %s1200_s20, 0 }
  0x49   : > { %s1094_s6 = sand.u32 (!%p1205_p0), 1, %s908_s13   ;;  %p1206_p5 = scmp.ne.s32.totalorder (!%p1205_p0), %s1198_s18, 0 }
  0x4a   : > { %172 = sbr.rel (%p1205_p0) target bundleno = 1211 (0x4bb), region = 32  ;;  %s643_s7 = sshll.u32 (!%p1205_p0), %s1094_s6, 5 }
  0x4b   : > { %s175_s10 = scalar_lea.sflag (!%p1205_p0), [#allocation3], %s1094_s6  ;;  %s178_s26 = scalar_lea.vmem (!%p1205_p0), [#allocation2], %s643_s7 }
  0x51   : > { %891 = dma.done.wait (%p1206_p5), %s175_s10, 512  }
  0x52   : > { %893 = vsyncadd (%p1206_p5), %s175_s10, 4294966784  ;;  %p1207_p11 = scmp.eq.s32.totalorder %s970_s16, 0 }
  0x54   : > { %895 = dma.done.wait (%p1207_p11), [#allocation6], 512   ;;  %p1208_p2 = pmov %p1207_p11 }
  0x55   : > { %v214_v0 = vld [vmem:[#allocation5] sm:$0xff]  ;;  %v215_v1 = vld [vmem:[#allocation5 + $0x8] sm:$0xff]  ;;  %v216_v2 = vld [vmem:[#allocation5 + $0x10] sm:$0xff]  ;;  %vm227_vm0 = vcmask 261120   ;;  %v922_v12 = vmov 0.0   ;;  %vm923_vm1 = vmmov 0  }
  0x56   : > { %897 = vsyncadd (%p1208_p2), [#allocation6], 4294966784  ;;  %v218_v3 = vpack.c.bf16 %v215_v1, %v214_v0  ;;  %v217_v4 = vld [vmem:[#allocation5 + $0x18] sm:$0xff]  ;;  %v208_v5 = vld [vmem:[%s178_s26] sm:$0xff]  ;;  %683 = vmatprep.subr.bf16.mxu1 %v922_v12  ;;  %685 = vmatprep.mubr.msk.bf16.mxu1 %vm923_vm1, %v922_v12  ;;  %s924_s8 = smov 112   ;;  %vm294_vm2 = vcmask 130048  }
  0x57   : > { %v209_v6 = vld [vmem:[%s178_s26 + $0x8] sm:$0xff]  ;;  %v219_v7 = vpack.c.bf16 %v217_v4, %v216_v2  ;;  %v210_v9 = vld [vmem:[%s178_s26 + $0x10] sm:$0xff]  ;;  %v211_v10 = vld [vmem:[%s178_s26 + $0x18] sm:$0xff]  ;;  %s925_s9 = smov 96   ;;  %s204_s4 = scalar_lea.vmem [#allocation7], %s643_s7 }
  0x58   : > { %v212_v8 = vpack.c.bf16 %v209_v6, %v208_v5  ;;  %675 = vmatprep.subr.bf16.mxu0 %v218_v3  ;;  %v213_v11 = vpack.c.bf16 %v211_v10, %v210_v9  ;;  %v646_v13 = vld [vmem:[%s1193_s2] ss:$0 sm:$0xff]  ;;  %s551_s25 = sshll.u32 %s204_s4, 4  ;;  %s662_s5 = sshll.u32 %s970_s16, 9  ;;  %s1139_s25 = int_to_ptr.vmem [resolvable:$true] %s551_s25 }
  0x59   : > { %676 = vmatpush3.bf16.msra.mxu0 %v218_v3  ;;  %s1145_s28 = scalar_lea.hbm %s1194_s3, %s662_s5  ;;  %s537_s16 = scalar_lea.sflag [#allocation4], %s1094_s6 }
  0x5a   : > { %679 = vmatprep.mubr.msk.bf16.mxu0 %vm227_vm0, %v212_v8  ;;  %677 = vmatprep.subr.bf16.mxu0 %v219_v7  ;;  %s846_s23 = scalar_lea.vmem %s1139_s25, 512  ;;  %s926_s29 = smov [#allocation7]  }
  0x5b   : > { %p847_p4 = scmp.ne.s32.totalorder %s1139_s25, %s846_s23  ;;  %s850_s30 = sshll.u32 %s926_s29, 4  ;;  %s851_s30 = int_to_ptr.vmem [resolvable:$false] %s850_s30 }
  0x5c   : > { %s852_s22 = scalar_lea.vmem %s851_s30, 1024  ;;  %p853_p10 = scmp.lt.s32.totalorder %s1139_s25, %s851_s30 }
  0x5d   : > { %678 = vmatpush3.bf16.msra.mxu0 %v219_v7  ;;  %p848_p6 = pnand %p847_p4, %p1043_p12  ;;  %p854_p13 = scmp.lt.s32.totalorder %s852_s22, %s846_s23 }
  0x5e   : > { %689 = vmatprep.subr.bf16.mxu0 %v922_v12 }
  0x5f   : > { %p849_p8 = pneg %p848_p6  ;;  %p855_p3 = por %p854_p13, %p853_p10 }
  0x60   : > { %680 = vmatmul.mubr.msk.bf16.vlgmr.msra.gmra.mrb[0].mxu0 %vm227_vm0, %v213_v11 }
  0x61   : > { %691 = vmatprep.mubr.msk.bf16.mxu0 %vm923_vm1, %v922_v12  ;;  %p856_p7 = pnand %p855_p3, %p849_p8 }
 0x133   : > { %v681_v14 = vpop.f32.mrb[0].mxu0 }
 0x134   : > { %v277_v15 = vadd.f32 %v681_v14, %v646_v13  ;;  %v268_v16 = vpop.f32.mrb[1].mxu0 }
 0x135   : > { %v269_v17 = vadd.f32 %v646_v13, %v268_v16  ;;  %v682_v18 = vpop.f32.mrb[2].mxu0 }
 0x136   : > { %v280_v19 = vadd.f32 %v682_v18, %v646_v13  ;;  %v271_v20 = vpop.f32.mrb[3].mxu0  ;;  %v285_v22 = vmul.f32 0.25, %v277_v15 }
 0x137   : > { %v272_v21 = vadd.f32 %v646_v13, %v271_v20  ;;  %v283_v25 = vmul.f32 0.25, %v269_v17 }
 0x138   : > { %v286_v23 = vmul.f32 0.25, %v280_v19  ;;  %v290_v24 = vpack.c.bf16 %v280_v19, %v277_v15 }
 0x139   : > { %v284_v26 = vmul.f32 0.25, %v272_v21  ;;  %v1113_v27 = vpack.c.bf16 %v272_v21, %v269_v17 }
 0x13a   : > { %v288_v28 = vpack.c.bf16 %v286_v23, %v285_v22 }
 0x13b   : > { %v287_v29 = vpack.c.bf16 %v284_v26, %v283_v25  ;;  %292 = vrot.lane.b32.xlu0 %v1113_v27, %s924_s8 }
 0x13f   : > { %343 = vrot.lane.b32.xlu0 %v290_v24, %s924_s8 }
 0x1ad   : > { %v293_v30 = vpop.permute.xlu0 %292 }
 0x1ae   : > { %v299_v31 = vsel %vm294_vm2, %v293_v30, 0 }
 0x1af   : > { %684 = vmatpush3.bf16.xpose.msra.mxu1 %v299_v31 }
 0x1b0   : > { %695 = vmatprep.subr.bf16.mxu1 %v922_v12 }
 0x1b1   : > { %v344_v32 = vpop.permute.xlu0 %343 }
 0x1b2   : > { %v349_v33 = vsel %vm294_vm2, %v344_v32, 0 }
 0x1b3   : > { %690 = vmatpush3.bf16.xpose.msra.mxu0 %v349_v33 }
 0x1b4   : > { %701 = vmatprep.subr.bf16.mxu0 %v922_v12 }
 0x1b6   : > { %686 = vmatmul.mubr.msk.bf16.vlgmr.msra.gmra.mrb[0].mxu1 %vm294_vm2, %v287_v29 }
 0x1b7   : > { %697 = vmatprep.mubr.msk.bf16.mxu1 %vm923_vm1, %v922_v12 }
 0x1ba   : > { %692 = vmatmul.mubr.msk.bf16.vlgmr.msra.gmra.mrb[4].mxu0 %vm294_vm2, %v288_v28 }
 0x1bb   : > { %703 = vmatprep.mubr.msk.bf16.mxu0 %vm923_vm1, %v922_v12 }
 0x289   : > { %v335_v34 = vpop.f32.mrb[0].mxu1 }
 0x28a   : > { %v687_v35 = vpop.f32.mrb[1].mxu1  ;;  %v392_v36 = vsel %vm294_vm2, %v335_v34, -inf }
 0x28b   : > { %393 = vmax.xlane.f32.xlu1 %v392_v36  ;;  %v338_v37 = vpop.f32.mrb[2].mxu1 }
 0x28c   : > { %v688_v38 = vpop.f32.mrb[3].mxu1  ;;  %v395_v42 = vsel %vm294_vm2, %v338_v37, -inf }
 0x28d   : > { %v385_v39 = vpop.f32.mrb[4].mxu0 }
 0x28e   : > { %v693_v40 = vpop.f32.mrb[5].mxu0  ;;  %v398_v41 = vsel %vm294_vm2, %v385_v39, -inf }
 0x28f   : > { %399 = vmax.xlane.f32.xlu0 %v398_v41  ;;  %v388_v43 = vpop.f32.mrb[6].mxu0  ;;  %396 = vmax.xlane.f32.xlu1 %v395_v42 }
 0x290   : > { %v694_v44 = vpop.f32.mrb[7].mxu0  ;;  %v401_v45 = vsel %vm294_vm2, %v388_v43, -inf }
 0x293   : > { %402 = vmax.xlane.f32.xlu1 %v401_v45 }
 0x2a5   : > { %485 = vrot.lane.b32.xlu0 %v290_v24, %s925_s9 }
 0x318   : > { %v394_v46 = vpop.xlane.xlu1 %393 }
 0x319   : > { %v404_v47 = vsub.f32 %v335_v34, %v394_v46 }
 0x31b   : > { %v408_v51 = vmul.f32 1.442695, %v404_v47 }
 0x31c   : > { %v400_v48 = vpop.xlane.xlu0 %399  ;;  %v397_v49 = vpop.xlane.xlu1 %396 }
 0x31d   : > { %v406_v50 = vsub.f32 %v385_v39, %v400_v48  ;;  %v405_v56 = vsub.f32 %v338_v37, %v397_v49 }
 0x31f   : > { %v412_v52 = vmul.f32 1.442695, %v406_v50  ;;  %v410_v58 = vmul.f32 1.442695, %v405_v56 }
 0x320   : > { %v486_v53 = vpop.permute.xlu0 %485  ;;  %v403_v54 = vpop.xlane.xlu1 %402 }
 0x321   : > { %772 = vpow2.f32 %v412_v52  ;;  %v407_v55 = vsub.f32 %v388_v43, %v403_v54  ;;  %702 = vmatpush3.bf16.msra.mxu0 %v486_v53 }
 0x322   : > { %774 = vpow2.f32 %v408_v51 }
 0x323   : > { %v414_v57 = vmul.f32 1.442695, %v407_v55 }
 0x325   : > { %776 = vpow2.f32 %v414_v57 }
 0x326   : > { %778 = vpow2.f32 %v410_v58 }
 0x32b   : > { %v773_v59 = vpop.eup %772 }
 0x32c   : > { %v422_v60 = vsel %vm294_vm2, %v773_v59, 0.0  ;;  %v775_v61 = vpop.eup %774 }
 0x32d   : > { %423 = vadd.xlane.f32.xlu1 %v422_v60  ;;  %v416_v62 = vsel %vm294_vm2, %v775_v61, 0.0 }
 0x32f   : > { %v777_v63 = vpop.eup %776 }
 0x330   : > { %v425_v0 = vsel %vm294_vm2, %v777_v63, 0.0  ;;  %v779_v1 = vpop.eup %778 }
 0x331   : > { %417 = vadd.xlane.f32.xlu1 %v416_v62  ;;  %v419_v2 = vsel %vm294_vm2, %v779_v1, 0.0 }
 0x335   : > { %426 = vadd.xlane.f32.xlu1 %v425_v0 }
 0x339   : > { %420 = vadd.xlane.f32.xlu1 %v419_v2 }
 0x34a   : > { %438 = vrot.lane.b32.xlu1 %v1113_v27, %s925_s9 }
 0x3ba   : > { %v424_v3 = vpop.xlane.xlu1 %423 }
 0x3bb   : > { %780 = vrcp.f32 %v424_v3 }
 0x3be   : > { %v418_v4 = vpop.xlane.xlu1 %417 }
 0x3c2   : > { %v427_v5 = vpop.xlane.xlu1 %426 }
 0x3c3   : > { %782 = vrcp.f32 %v427_v5 }
 0x3c4   : > { %784 = vrcp.f32 %v418_v4 }
 0x3c5   : > { %v781_v8 = vpop.eup %780 }
 0x3c6   : > { %v421_v6 = vpop.xlane.xlu1 %420  ;;  %v434_v10 = vmul.f32 %v781_v8, %v773_v59 }
 0x3c7   : > { %786 = vrcp.f32 %v421_v6 }
 0x3ca   : > { %v439_v7 = vpop.permute.xlu1 %438 }
 0x3cb   : > { %696 = vmatpush3.bf16.msra.mxu1 %v439_v7 }
 0x3cd   : > { %v783_v9 = vpop.eup %782 }
 0x3ce   : > { %v435_v11 = vmul.f32 %v783_v9, %v777_v63  ;;  %v785_v12 = vpop.eup %784 }
 0x3cf   : > { %v432_v15 = vmul.f32 %v785_v12, %v775_v61 }
 0x3d0   : > { %v437_v13 = vpack.c.bf16 %v435_v11, %v434_v10 }
 0x3d1   : > { %v787_v14 = vpop.eup %786 }
 0x3d2   : > { %v433_v16 = vmul.f32 %v787_v14, %v779_v1  ;;  %704 = vmatmul.mubr.msk.bf16.vlgmr.msra.gmra.mrb[8].mxu0 %vm294_vm2, %v437_v13 }
 0x3d4   : > { %v436_v17 = vpack.c.bf16 %v433_v16, %v432_v15 }
 0x3d6   : > { %698 = vmatmul.mubr.msk.bf16.vlgmr.msra.gmra.mrb[4].mxu1 %vm294_vm2, %v436_v17 }
 0x4a5   : > { %v525_v18 = vpop.f32.mrb[8].mxu0 }
 0x4a6   : > { %534 = vst.msk [vmem:[%s204_s4 + $0x10] sm:$0xff] %vm294_vm2, %v525_v18  ;;  %v705_v19 = vpop.f32.mrb[9].mxu0 }
 0x4a7   : > { %v528_v20 = vpop.f32.mrb[10].mxu0 }
 0x4a8   : > { %535 = vst.msk [vmem:[%s204_s4 + $0x18] sm:$0xff] %vm294_vm2, %v528_v20  ;;  %v706_v21 = vpop.f32.mrb[11].mxu0 }
 0x4a9   : > { %v478_v22 = vpop.f32.mrb[4].mxu1 }
 0x4aa   : > { %532 = vst.msk [vmem:[%s204_s4] sm:$0xff] %vm294_vm2, %v478_v22  ;;  %v699_v23 = vpop.f32.mrb[5].mxu1 }
 0x4ab   : > { %v481_v24 = vpop.f32.mrb[6].mxu1 }
 0x4ac   : > { %533 = vst.msk [vmem:[%s204_s4 + $0x8] sm:$0xff] %vm294_vm2, %v481_v24  ;;  %v700_v25 = vpop.f32.mrb[7].mxu1 }
 0x4ad   : > { %859 = shalt.err (!%p856_p7)
}
 0x4ae   : > { %s860_s7 = scalar_lea.hbm %s1145_s28, 512  ;;  %s864_s18 = scalar_lea.hbm %s1194_s3, 1024 }
 0x4af   : > { %p861_p9 = scmp.ne.s32.totalorder %s1145_s28, %s860_s7  ;;  %p865_p5 = scmp.lt.u32.totalorder %s1145_s28, %s1194_s3 }
 0x4b0   : > { %p866_p11 = scmp.lt.u32.totalorder %s864_s18, %s860_s7  ;;  %p868_p4 = scmp.lt.u32.totalorder %s860_s7, %s1145_s28 }
 0x4b1   : > { %p862_p1 = pnand %p861_p9, %p1043_p12 }
 0x4b2   : > { %p867_p2 = por %p866_p11, %p865_p5 }
 0x4b3   : > { %p863_p0 = pneg %p862_p1 }
 0x4b4   : > { %p869_p6 = por %p868_p4, %p867_p2 }
 0x4b6   : > { %p870_p8 = pnand %p869_p6, %p863_p0 }
 0x4b8   : > { %873 = shalt.err (!%p870_p8)
}
 0x4b9   : > { %s927_s9 = smov 128   ;;  %s928_s4 = smov 8  }
 0x4ba   : > { %713 = dma.vmem_to_hbm [thread:$0]  (%p1043_p12), %s1139_s25, 512, %s1145_s28, %s537_s16, %s927_s9, %s927_s9, %s928_s4  }
 0x4bb PF: > { %s566_s5 = sand.u32 1, %s904_s12   ;;  %p1209_p10 = scmp.ne.s32.totalorder %s1199_s19, 0 }
 0x4bc   : > { %p1210_p13 = scmp.ge.s32.totalorder %s916_s15, 2  ;;  %s567_s11 = scalar_lea.sflag [#allocation4], %s566_s5 }
 0x4be   : > { %p724_p3 = pnand %p1210_p13, %p1209_p10 }
 0x4c0   : > { %899 = dma.done.wait (!%p724_p3), %s567_s11, 512  }
 0x4c1   : > { %901 = vsyncadd (!%p724_p3), %s567_s11, 4294966784  ;;  %p17_p7 = scmp.ge.s32.totalorder %s1005_s24, 4   ;;  %s1211_s12 = smov %s908_s13 }
 0x4c2   : > { %s1212_s13 = smov %s912_s14  ;;  %s1213_s14 = smov %s1039_s17 }
 0x4c3   : > { %s1214_s15 = smov %s1005_s24  ;;  %19 = sbr.rel (!%p17_p7) target bundleno = 6 (0x6), region = 81 }
 0x4ca   :  { %572 = vsyncpa [#allocation3], 1 }
 0x4cb   :  { %574 = vsyncpa [#allocation3 + $0x1], 1 }
 0x4cc   :  { %575 = vsyncpa [#allocation6], 1 }
 0x4cd   :  { %576 = vsyncpa [#allocation4], 1 }
 0x4ce   :  { %578 = vsyncpa [#allocation4 + $0x1], 1 }

</bundles_post_ra>
